<compile_context>
chip_gen: v7x
topology: tpu7x:2x2x1
jax: 0.10.0
libtpu: 0.0.40
codegen_flags: <defaults>
</compile_context>

<pallas_src>
import functools

import jax
import jax.numpy as jnp
from jax import lax
from jax.experimental import pallas as pl
from jax.experimental.pallas import tpu as pltpu

H = 50           # hidden width (fc1: 1->50, fc2: 50->50, fc3: 50->1)
CHUNK = 512      # lanes processed per inner-loop chunk (multiple of 128)
MAX_CHUNKS = 8   # max 512-lane chunks per grid step -> up to (1, 4096) blocks


def kfun_kernel(x_ref, w1_ref, b1_ref, w2_ref, b2_ref, w3_ref, b3_ref, o_ref,
                *, n_chunks):
    # Hoist the tiny, grid-invariant weight loads out of the chunk loop.
    w1 = w1_ref[...]        # (H, 1)  act dtype
    b1 = b1_ref[...]        # (H, 1)  act dtype
    w2 = w2_ref[...]        # (H, H)  MXU dtype
    b2 = b2_ref[...]        # (H, 1)  act dtype
    w3 = w3_ref[...]        # (H, 1)  f32
    b3 = b3_ref[...]        # (1, 1)  f32

    def chunk_body(c, carry):
        off = pl.multiple_of(c * CHUNK, CHUNK)
        x = x_ref[:, pl.ds(off, CHUNK)]                        # (1, CHUNK)

        # Layer 1: K=1 outer product -> VPU broadcast FMA, tanh on the EUP.
        h1 = jnp.tanh(w1 * x + b1)                             # (H, CHUNK)

        # Layer 2: the only MXU matmul (50x50 @ 50xCHUNK), f32 accumulation.
        z2 = jnp.dot(w2, h1.astype(w2.dtype),
                     preferred_element_type=jnp.float32)       # (H, CHUNK) f32
        h2 = jnp.tanh(z2.astype(b2.dtype) + b2)                # (H, CHUNK)

        # Layer 3: output width 1 -> sublane reduce in f32 (VPU+XLU), no MXU.
        y = jnp.sum(w3 * h2.astype(jnp.float32), axis=0, keepdims=True) + b3
        o_ref[:, pl.ds(off, CHUNK)] = y.astype(o_ref.dtype)    # (1, CHUNK)
        return carry

    lax.fori_loop(0, n_chunks, chunk_body, 0, unroll=True)


def _bf16_vpu_supported():
    """bf16 VPU/EUP exist on v6e / v7x; v5e and older must stay in f32."""
    try:
        kind = jax.devices()[0].device_kind.lower()
    except Exception:  # no devices / unexpected backend -> safe f32 default
        return False
    return any(tag in kind for tag in ("v6", "v7", "7x"))


def kfun_forward(x, params, *, mxu_dtype=jnp.bfloat16, act_dtype=None):
    """x: (N, 1) float32. params in PyTorch layout:
         w1 (H,1), b1 (H,), w2 (H,H) [out,in], b2 (H,), w3 (1,H), b3 (1,)."""
    if act_dtype is None:
        act_dtype = jnp.bfloat16 if _bf16_vpu_supported() else jnp.float32

    N = x.shape[0]

    # Lane block size: up to MAX_CHUNKS*CHUNK lanes per grid step, but keep the
    # grid at >=2 steps whenever possible (v7x has 2 TensorCores sharded over
    # the "parallel" axis); for small N shrink the block instead.
    n_chunks = MAX_CHUNKS
    while n_chunks > 1 and pl.cdiv(N, CHUNK * n_chunks) < 2:
        n_chunks //= 2
    tbl = CHUNK * n_chunks
    n_pad = pl.cdiv(N, tbl) * tbl
    n_steps = n_pad // tbl

    # Batch-on-lanes: (N,1) -> (1,N); zero-pad the lane axis to a block multiple.
    x_row = x.reshape(1, N).astype(act_dtype)
    if n_pad != N:
        x_row = jnp.pad(x_row, ((0, 0), (0, n_pad - N)))

    # One-time wrapper-side reshapes / casts (nothing reshaped in-kernel).
    w1 = params["w1"].reshape(H, 1).astype(act_dtype)
    b1 = params["b1"].reshape(H, 1).astype(act_dtype)
    w2 = params["w2"].astype(mxu_dtype)                        # (H,H) [out,in]
    b2 = params["b2"].reshape(H, 1).astype(act_dtype)
    w3 = params["w3"].reshape(H, 1).astype(jnp.float32)        # (1,H) -> column
    b3 = params["b3"].reshape(1, 1).astype(jnp.float32)

    # Full-array constant-index blocks: VMEM-resident across the whole grid,
    # single pipeline buffer (they are fetched exactly once).
    def full(a):
        nd = a.ndim
        return pl.BlockSpec(a.shape, lambda i: (0,) * nd,
                            pipeline_mode=pl.Buffered(1))

    # Deeper buffering on x only pays off once the grid is long enough.
    x_mode = pl.Buffered(3) if n_steps >= 4 else None

    kernel = functools.partial(kfun_kernel, n_chunks=n_chunks)

    out_row = pl.pallas_call(
        kernel,
        out_shape=jax.ShapeDtypeStruct((1, n_pad), jnp.float32),
        grid_spec=pltpu.PrefetchScalarGridSpec(
            num_scalar_prefetch=0,
            grid=(n_steps,),
            in_specs=[
                pl.BlockSpec((1, tbl), lambda i: (0, i), pipeline_mode=x_mode),
                full(w1), full(b1), full(w2), full(b2), full(w3), full(b3),
            ],
            out_specs=pl.BlockSpec((1, tbl), lambda i: (0, i)),
        ),
        compiler_params=pltpu.CompilerParams(
            dimension_semantics=("parallel",)),
    )(x_row, w1, b1, w2, b2, w3, b3)

    return out_row[0, :N].reshape(N, 1)


def init_params(key):
    """PyTorch nn.Linear default init (U[-1/sqrt(fan_in), +1/sqrt(fan_in)]),
    stored in PyTorch (out, in) layout."""
    k1, k2, k3, k4, k5, k6 = jax.random.split(key, 6)

    def lin(kw, kb, fan_in, fan_out):
        bound = 1.0 / jnp.sqrt(jnp.float32(fan_in))
        w = jax.random.uniform(kw, (fan_out, fan_in), jnp.float32, -bound, bound)
        b = jax.random.uniform(kb, (fan_out,), jnp.float32, -bound, bound)
        return w, b

    w1, b1 = lin(k1, k2, 1, H)
    w2, b2 = lin(k3, k4, H, H)
    w3, b3 = lin(k5, k6, H, 1)
    return {"w1": w1, "b1": b1, "w2": w2, "b2": b2, "w3": w3, "b3": b3}


def kfun_reference(x, p):
    h1 = jnp.tanh(x @ p["w1"].T + p["b1"])
    h2 = jnp.tanh(h1 @ p["w2"].T + p["b2"])
    return h2 @ p["w3"].T + p["b3"]


if __name__ == "__main__":
    key = jax.random.PRNGKey(0)
    kx, kp = jax.random.split(key)
    params = init_params(kp)

    # Case 1 (N=1000): non-multiple of the tile -> padding path, 512-lane
    #   blocks, 2-step grid (both v7x TensorCores busy).
    # Case 2 (N=6000): 4096-lane blocks -> the 8-chunk inner loop is exercised.
    for n in (1000, 6000):
        x = jax.random.normal(jax.random.fold_in(kx, n), (n, 1), jnp.float32)
        ref = kfun_reference(x, params)

        # Exact-semantics path: everything f32, tight tolerance.
        out_exact = jax.block_until_ready(
            kfun_forward(x, params, mxu_dtype=jnp.float32,
                         act_dtype=jnp.float32))
        assert out_exact.shape == (n, 1)
        assert jnp.allclose(out_exact, ref, atol=1e-5, rtol=1e-5)

        # Default fast path: bf16 MXU operands; bf16 activations on v6e/v7x,
        # f32 on v5e. Loose tolerance covers the bf16-activation case.
        out = jax.block_until_ready(kfun_forward(x, params))
        assert out.shape == (n, 1)
        assert jnp.allclose(out, ref, atol=5e-2, rtol=5e-2)

    print("KERNEL_OK")
</pallas_src>

<mosaic_0001>
module attributes {stable_mosaic.version = 11 : i64} {
  func.func @kfun_kernel(%arg0: i32, %arg1: memref<1x512xf32, #tpu.memory_space<vmem>>, %arg2: memref<50x1xf32, #tpu.memory_space<vmem>>, %arg3: memref<50x1xf32, #tpu.memory_space<vmem>>, %arg4: memref<50x50xf32, #tpu.memory_space<vmem>>, %arg5: memref<50x1xf32, #tpu.memory_space<vmem>>, %arg6: memref<50x1xf32, #tpu.memory_space<vmem>>, %arg7: memref<1x1xf32, #tpu.memory_space<vmem>>, %arg8: memref<1x512xf32, #tpu.memory_space<vmem>>) attributes {dimension_semantics = [#tpu.dimension_semantics<parallel>], iteration_bounds = array<i64: 2>, scalar_prefetch = 0 : i64, scratch_operands = 0 : i64, tpu.core_type = #tpu.core_type<tc>, window_params = [{transform_indices = @transform_0, window_bounds = array<i64: 1, 512>}, {pipeline_mode = #tpu.pipeline_mode<synchronous>, transform_indices = @transform_1, window_bounds = array<i64: 50, 1>}, {pipeline_mode = #tpu.pipeline_mode<synchronous>, transform_indices = @transform_2, window_bounds = array<i64: 50, 1>}, {pipeline_mode = #tpu.pipeline_mode<synchronous>, transform_indices = @transform_3, window_bounds = array<i64: 50, 50>}, {pipeline_mode = #tpu.pipeline_mode<synchronous>, transform_indices = @transform_4, window_bounds = array<i64: 50, 1>}, {pipeline_mode = #tpu.pipeline_mode<synchronous>, transform_indices = @transform_5, window_bounds = array<i64: 50, 1>}, {pipeline_mode = #tpu.pipeline_mode<synchronous>, transform_indices = @transform_6, window_bounds = array<i64: 1, 1>}, {transform_indices = @transform_7, window_bounds = array<i64: 1, 512>}]} {
    %c0 = arith.constant 0 : index
    %c0_0 = arith.constant 0 : index
    %0 = vector.load %arg2[%c0, %c0_0] : memref<50x1xf32, #tpu.memory_space<vmem>>, vector<50x1xf32>
    %c0_1 = arith.constant 0 : index
    %c0_2 = arith.constant 0 : index
    %1 = vector.load %arg3[%c0_1, %c0_2] : memref<50x1xf32, #tpu.memory_space<vmem>>, vector<50x1xf32>
    %c0_3 = arith.constant 0 : index
    %c0_4 = arith.constant 0 : index
    %2 = vector.load %arg4[%c0_3, %c0_4] : memref<50x50xf32, #tpu.memory_space<vmem>>, vector<50x50xf32>
    %c0_5 = arith.constant 0 : index
    %c0_6 = arith.constant 0 : index
    %3 = vector.load %arg5[%c0_5, %c0_6] : memref<50x1xf32, #tpu.memory_space<vmem>>, vector<50x1xf32>
    %c0_7 = arith.constant 0 : index
    %c0_8 = arith.constant 0 : index
    %4 = vector.load %arg6[%c0_7, %c0_8] : memref<50x1xf32, #tpu.memory_space<vmem>>, vector<50x1xf32>
    %c0_9 = arith.constant 0 : index
    %c0_10 = arith.constant 0 : index
    %5 = vector.load %arg7[%c0_9, %c0_10] : memref<1x1xf32, #tpu.memory_space<vmem>>, vector<1x1xf32>
    %c0_i32 = arith.constant 0 : i32
    %c512_i32 = arith.constant 512 : i32
    %6 = arith.muli %c0_i32, %c512_i32 : i32
    %7 = tpu.assume_multiple %6, 512 : i32
    %c0_11 = arith.constant 0 : index
    %8 = arith.index_cast %7 : i32 to index
    %9 = vector.load %arg1[%c0_11, %8] : memref<1x512xf32, #tpu.memory_space<vmem>>, vector<1x512xf32>
    %10 = vector.broadcast %0 : vector<50x1xf32> to vector<50x512xf32>
    %11 = vector.broadcast %9 : vector<1x512xf32> to vector<50x512xf32>
    %12 = arith.mulf %10, %11 : vector<50x512xf32>
    %13 = vector.broadcast %1 : vector<50x1xf32> to vector<50x512xf32>
    %14 = arith.addf %12, %13 : vector<50x512xf32>
    %15 = math.tanh %14 : vector<50x512xf32>
    %cst = arith.constant dense<0.000000e+00> : vector<50x512xf32>
    %16 = tpu.matmul %2, %15, %cst {dimension_numbers = #tpu.dot_dimension_numbers<[1], [0], [0], [1], [0, 0, 1, 1], [], []>} : vector<50x50xf32>, vector<50x512xf32>, vector<50x512xf32> -> vector<50x512xf32>
    %17 = vector.broadcast %3 : vector<50x1xf32> to vector<50x512xf32>
    %18 = arith.addf %16, %17 : vector<50x512xf32>
    %19 = math.tanh %18 : vector<50x512xf32>
    %20 = vector.broadcast %4 : vector<50x1xf32> to vector<50x512xf32>
    %21 = arith.mulf %20, %19 : vector<50x512xf32>
    %cst_12 = arith.constant dense<0.000000e+00> : vector<512xf32>
    %22 = vector.multi_reduction <add>, %21, %cst_12 [0] : vector<50x512xf32> to vector<512xf32>
    %23 = vector.shape_cast %22 : vector<512xf32> to vector<1x512xf32>
    %24 = vector.broadcast %5 : vector<1x1xf32> to vector<1x512xf32>
    %25 = arith.addf %23, %24 : vector<1x512xf32>
    %c0_13 = arith.constant 0 : index
    %26 = arith.index_cast %7 : i32 to index
    %27 = vector.load %arg8[%c0_13, %26] : memref<1x512xf32, #tpu.memory_space<vmem>>, vector<1x512xf32>
    tpu.vector_store %arg8[%c0_13, %26], %25 {strides = array<i32>} : memref<1x512xf32, #tpu.memory_space<vmem>>, vector<1x512xf32>,
    %c1_i32 = arith.constant 1 : i32
    return
  }
  func.func @transform_0(%arg0: i32) -> (i32, i32) {
    %c0_i32 = arith.constant 0 : i32
    %c0_i32_0 = arith.constant 0 : i32
    return %c0_i32, %arg0 : i32, i32
  }
  func.func @transform_1(%arg0: i32) -> (i32, i32) {
    %c0_i32 = arith.constant 0 : i32
    %c0_i32_0 = arith.constant 0 : i32
    %c0_i32_1 = arith.constant 0 : i32
    return %c0_i32, %c0_i32_0 : i32, i32
  }
  func.func @transform_2(%arg0: i32) -> (i32, i32) {
    %c0_i32 = arith.constant 0 : i32
    %c0_i32_0 = arith.constant 0 : i32
    %c0_i32_1 = arith.constant 0 : i32
    return %c0_i32, %c0_i32_0 : i32, i32
  }
  func.func @transform_3(%arg0: i32) -> (i32, i32) {
    %c0_i32 = arith.constant 0 : i32
    %c0_i32_0 = arith.constant 0 : i32
    %c0_i32_1 = arith.constant 0 : i32
    return %c0_i32, %c0_i32_0 : i32, i32
  }
  func.func @transform_4(%arg0: i32) -> (i32, i32) {
    %c0_i32 = arith.constant 0 : i32
    %c0_i32_0 = arith.constant 0 : i32
    %c0_i32_1 = arith.constant 0 : i32
    return %c0_i32, %c0_i32_0 : i32, i32
  }
  func.func @transform_5(%arg0: i32) -> (i32, i32) {
    %c0_i32 = arith.constant 0 : i32
    %c0_i32_0 = arith.constant 0 : i32
    %c0_i32_1 = arith.constant 0 : i32
    return %c0_i32, %c0_i32_0 : i32, i32
  }
  func.func @transform_6(%arg0: i32) -> (i32, i32) {
    %c0_i32 = arith.constant 0 : i32
    %c0_i32_0 = arith.constant 0 : i32
    %c0_i32_1 = arith.constant 0 : i32
    return %c0_i32, %c0_i32_0 : i32, i32
  }
  func.func @transform_7(%arg0: i32) -> (i32, i32) {
    %c0_i32 = arith.constant 0 : i32
    %c0_i32_0 = arith.constant 0 : i32
    return %c0_i32, %arg0 : i32, i32
  }
}

</mosaic_0001>

<bundles_post_ra>
// kernel: tpu_custom_call.1
= control target key start
LH: loop header
LB: loop body
LE: loop exit
PB: predicated region body
PF: predicated region fallthrough
CT: control target
= control target key end

     0   :  { %s1664_s0 = inlined_call_operand.vmem [shape: f32[1,1024], index: 0, kind: input, shape index: {}]   ;;  %s1665_s1 = inlined_call_operand.vmem [shape: f32[50,1], index: 1, kind: input, shape index: {}]   ;;  %s1666_s2 = inlined_call_operand.vmem [shape: f32[50,1], index: 2, kind: input, shape index: {}]   ;;  %s1667_s3 = inlined_call_operand.vmem [shape: f32[50,50], index: 3, kind: input, shape index: {}]   ;;  %s1668_s4 = inlined_call_operand.vmem [shape: f32[50,1], index: 4, kind: input, shape index: {}]   ;;  %s1669_s5 = inlined_call_operand.vmem [shape: f32[50,1], index: 5, kind: input, shape index: {}]   ;;  %s1670_s6 = inlined_call_operand.<no memory space> [shape: f32[1,1], index: 6, kind: input, shape index: {}]   ;;  %s1671_s7 = inlined_call_operand.hbm [shape: f32[1,1024], index: 7, kind: output, shape index: {}]  }
   0x1   :  { %v12_v0 = vstv %s1670_s6 }
   0x2   :  { %13 = vst [vmem:[#allocation2] sm:$0x1] %v12_v0 }
   0x3   :  { %14 = vsyncpa [#allocation4], 0 }
   0x4   :  { %16 = vsyncpa [#allocation4 + $0x1], 0  ;;  %s1357_s26 = smov 0   ;;  %s1359_s27 = smov 0  }
   0x5   :  { %s1361_s28 = smov 0   ;;  %s1363_s29 = smov 0  }
   0x6 LB: > { %s1378_s6 = sadd.s32 4294967295, %s1308_s29   ;;  %s1036_s30 = sadd.s32 4294967294, %s1308_s29   ;;  %s1308_s29 = sphi %s1363_s29, %s1677_s29   ;;  %s1304_s28 = sphi %s1361_s28, %s1676_s28   ;;  %s1300_s27 = sphi %s1359_s27, %s1675_s27   ;;  %s1296_s26 = sphi %s1357_s26, %s1674_s26  }
   0x7   : > { %s1382_s8 = sadd.s32 1, %s1308_s29   ;;  %s181_s9 = sadd.s32 1, %s1304_s28 }
   0x8   : > { %s178_s10 = ssub.s32 %s1308_s29, %s1382_s8  ;;  %p191_p0 = scmp.ne.s32.totalorder %s1304_s28, %s1300_s27 }
   0x9   : > { %p179_p1 = scmp.eq.s32.totalorder %s178_s10, 0  ;;  %p192_p2 = scmp.eq.s32.totalorder %s1378_s6, 1 }
   0xa   : > { %p197_p3 = scmp.ne.s32.totalorder %s1300_s27, %s1296_s26  ;;  %p198_p4 = scmp.eq.s32.totalorder %s1036_s30, 1 }
   0xb   : > { %s1393_s11 = scalar_select %p179_p1, %s1304_s28, %s181_s9  }
   0xc   : > { %p1395_p5 = por %p192_p2, %p191_p0  ;;  %p1399_p6 = por %p198_p4, %p197_p3 }
   0xd   : > { %p1039_p7 = scmp.ge.s32.totalorder %s1308_s29, 1  ;;  %p242_p8 = scmp.lt.s32.totalorder %s1308_s29, 3 }
   0xf   : > { %p243_p9 = pnand %p1039_p7, %p242_p8 }
  0x10   : > { %v286_v1 = vld [vmem:[%s1666_s2] sm:$0xff] (!%p243_p9)  ;;  %v1310_v3 = vmov (!%p243_p9), 0   ;;  %v287_v4 = vld [vmem:[%s1666_s2 + $0x8] sm:$0xff] (!%p243_p9)  ;;  %v282_v6 = vld [vmem:[%s1665_s1 + $0x18] sm:$0xff] (!%p243_p9)  ;;  %v1311_v28 = vmov (!%p243_p9), 0.0   ;;  %s1041_s25 = sshll.u32 (!%p243_p9), %s1378_s6, 2  ;;  %v352_v32 = vlaneseq (!%p243_p9) }
  0x11   : > { %246 = sbr.rel (%p243_p9) target bundleno = 485 (0x1e5), region = 48  ;;  %v279_v2 = vld [vmem:[%s1665_s1] sm:$0xff] (!%p243_p9)  ;;  %1133 = vset.pattern.permute.xlu1 (!%p243_p9), %v1310_v3  ;;  %1132 = vset.pattern.permute.xlu0 (!%p243_p9), %v1310_v3  ;;  %v280_v5 = vld [vmem:[%s1665_s1 + $0x8] sm:$0xff] (!%p243_p9)  ;;  %v281_v7 = vld [vmem:[%s1665_s1 + $0x10] sm:$0xff] (!%p243_p9)  ;;  %p274_p10 = scmp.lt.s32.totalorder (!%p243_p9), %s1041_s25, 7  ;;  %vm548_vm0 = vcmask (!%p243_p9), 1041408  }
  0x12   : > { %402 = vperm.xlu1 (!%p243_p9), %1133, %v286_v1   ;;  %318 = vperm.xlu0 (!%p243_p9), %1132, %v279_v2   ;;  %v289_v8 = vld [vmem:[%s1666_s2 + $0x18] sm:$0xff] (!%p243_p9)  ;;  %v288_v9 = vld [vmem:[%s1666_s2 + $0x10] sm:$0xff] (!%p243_p9)  ;;  %v284_v10 = vld [vmem:[%s1665_s1 + $0x28] sm:$0xff] (!%p243_p9)  ;;  %v1493_v33 = vshrl.u32 (!%p243_p9), %v352_v32, 7  ;;  %vm526_vm1 = vcmask (!%p243_p9), 408576   ;;  %s1065_s15 = sshll.u32 (!%p243_p9), %s1378_s6, 6 }
  0x13   : > { %v283_v11 = vld [vmem:[%s1665_s1 + $0x20] sm:$0xff] (!%p243_p9)  ;;  %v291_v12 = vld [vmem:[%s1666_s2 + $0x28] sm:$0xff] (!%p243_p9)  ;;  %v292_v14 = vld [vmem:[%s1666_s2 + $0x30] sm:$0x3] (!%p243_p9)  ;;  %625 = vmatprep.mubr.f32.mxu0 (!%p243_p9), %v1311_v28  ;;  %732 = vmatprep.mubr.f32.mxu1 (!%p243_p9), %v1311_v28  ;;  %vm962_vm2 = vcmp.lt.s32.totalorder (!%p243_p9), %v352_v32, 512  ;;  %s1622_s20 = scalar_lea.hbm (!%p243_p9), %s1671_s7, %s1065_s15  ;;  %s1313_s6 = smov (!%p243_p9), [#allocation3]  }
  0x14   : > { %v290_v13 = vld [vmem:[%s1666_s2 + $0x20] sm:$0xff] (!%p243_p9)  ;;  %v285_v15 = vld [vmem:[%s1665_s1 + $0x30] sm:$0x3] (!%p243_p9)  ;;  %v301_v16 = vld [vmem:[%s1668_s4 + $0x8] sm:$0xff] (!%p243_p9)  ;;  %v354_v34 = vsub.s32 (!%p243_p9), 0, %v1493_v33  ;;  %v358_v35 = vsub.s32 (!%p243_p9), 1, %v1493_v33 }
  0x15   : > { %v300_v17 = vld [vmem:[%s1668_s4] sm:$0xff] (!%p243_p9)  ;;  %v303_v18 = vld [vmem:[%s1668_s4 + $0x18] sm:$0xff] (!%p243_p9)  ;;  %v302_v19 = vld [vmem:[%s1668_s4 + $0x10] sm:$0xff] (!%p243_p9)  ;;  %v362_v36 = vsub.s32 (!%p243_p9), 2, %v1493_v33  ;;  %v366_v37 = vsub.s32 (!%p243_p9), 3, %v1493_v33  ;;  %s1250_s23 = sshll.u32 (!%p243_p9), %s1313_s6, 4  ;;  %s1251_s23 = int_to_ptr.vmem [resolvable:$false] %s1250_s23 }
  0x16   : > { %407 = vperm.xlu1 (!%p243_p9), %1133, %v287_v4   ;;  %323 = vperm.xlu0 (!%p243_p9), %1132, %v280_v5   ;;  %v305_v20 = vld [vmem:[%s1668_s4 + $0x28] sm:$0xff] (!%p243_p9)  ;;  %v304_v21 = vld [vmem:[%s1668_s4 + $0x20] sm:$0xff] (!%p243_p9)  ;;  %v306_v23 = vld [vmem:[%s1668_s4 + $0x30] sm:$0x3] (!%p243_p9)  ;;  %s1252_s24 = scalar_lea.vmem (!%p243_p9), %s1251_s23, 128 }
  0x17   : > { %v307_v22 = vld [vmem:[%s1669_s5] sm:$0xff] (!%p243_p9)  ;;  %v309_v24 = vld [vmem:[%s1669_s5 + $0x10] sm:$0xff] (!%p243_p9)  ;;  %v308_v25 = vld [vmem:[%s1669_s5 + $0x8] sm:$0xff] (!%p243_p9) }
  0x18   : > { %v311_v26 = vld [vmem:[%s1669_s5 + $0x20] sm:$0xff]  ;;  %v310_v27 = vld [vmem:[%s1669_s5 + $0x18] sm:$0xff]  ;;  %v313_v29 = vld [vmem:[%s1669_s5 + $0x30] sm:$0x3]  ;;  %s1679_s25 = smov (!%p274_p10, %s1041_s25), 7 }
  0x19   : > { %v312_v30 = vld [vmem:[%s1669_s5 + $0x28] sm:$0xff]  ;;  %v314_v31 = vld [vmem:[#allocation2] sm:$0x1]  ;;  %s276_s10 = scalar_lea.vmem %s1664_s0, %s1679_s25 }
  0x1a   : > { %333 = vperm.xlu1 %1133, %v282_v6   ;;  %328 = vperm.xlu0 %1132, %v281_v7   ;;  %v315_v38 = vld [vmem:[%s276_s10] sm:$0xf]  ;;  %s270_s10 = sand.u32 1, %s1300_s27  }
  0x1b   : > { %v1504_v39 = vrot.slane %v315_v38, %v354_v34  ;;  %v1506_v40 = vrot.slane %v315_v38, %v358_v35  ;;  %v1508_v41 = vrot.slane %v315_v38, %v362_v36  ;;  %v1510_v42 = vrot.slane %v315_v38, %v366_v37  ;;  %s1040_s14 = sshll.u32 %s270_s10, 2  ;;  %s966_s21 = scalar_lea.sflag [#allocation4], %s270_s10 }
  0x1c   : > { %s272_s16 = scalar_lea.vmem [#allocation3], %s1040_s14 }
  0x1d   : > { %s980_s17 = sshll.u32 %s272_s16, 4  ;;  %s1624_s17 = int_to_ptr.vmem [resolvable:$true] %s980_s17 }
  0x1e   : > { %417 = vperm.xlu1 %1133, %v289_v8   ;;  %412 = vperm.xlu0 %1132, %v288_v9   ;;  %s1246_s22 = scalar_lea.vmem %s1624_s17, 64  ;;  %p1253_p0 = scmp.lt.s32.totalorder %s1624_s17, %s1251_s23 }
  0x1f   : > { %p1247_p11 = scmp.ne.s32.totalorder %s1624_s17, %s1246_s22  ;;  %p1254_p1 = scmp.lt.s32.totalorder %s1252_s24, %s1246_s22 }
  0x21   : > { %p1248_p12 = pnand %p1247_p11, %p1395_p5  ;;  %p1255_p2 = por %p1254_p1, %p1253_p0 }
  0x22   : > { %343 = vperm.xlu1 %1133, %v284_v10   ;;  %338 = vperm.xlu0 %1132, %v283_v11  }
  0x23   : > { %p1249_p13 = pneg %p1248_p12 }
  0x25   : > { %p1256_p3 = pnand %p1255_p2, %p1249_p13 }
  0x26   : > { %427 = vperm.xlu1 %1133, %v291_v12   ;;  %422 = vperm.xlu0 %1132, %v290_v13  }
  0x2a   : > { %432 = vperm.xlu1 %1133, %v292_v14   ;;  %348 = vperm.xlu0 %1132, %v285_v15  }
  0x2e   : > { %498 = vperm.xlu1 %1133, %v301_v16   ;;  %493 = vperm.xlu0 %1132, %v300_v17  }
  0x32   : > { %508 = vperm.xlu1 %1133, %v303_v18   ;;  %503 = vperm.xlu0 %1132, %v302_v19  }
  0x36   : > { %518 = vperm.xlu1 %1133, %v305_v20   ;;  %513 = vperm.xlu0 %1132, %v304_v21  }
  0x3a   : > { %805 = vperm.xlu1 %1133, %v307_v22   ;;  %523 = vperm.xlu0 %1132, %v306_v23  }
  0x3e   : > { %815 = vperm.xlu1 %1133, %v309_v24   ;;  %810 = vperm.xlu0 %1132, %v308_v25  }
  0x42   : > { %825 = vperm.xlu1 %1133, %v311_v26   ;;  %820 = vperm.xlu0 %1132, %v310_v27  }
  0x46   : > { %835 = vperm.xlu1 %1133, %v313_v29   ;;  %830 = vperm.xlu0 %1132, %v312_v30  }
  0x4a   : > { %920 = vperm.xlu0 %1132, %v314_v31  }
  0x91   : > { %v403_v43 = vpop.permute.xlu1 %402  ;;  %v319_v44 = vpop.permute.xlu0 %318 }
  0x92   : > { %v372_v45 = vmul.f32 %v1504_v39, %v319_v44  ;;  %v373_v46 = vmul.f32 %v1506_v40, %v319_v44  ;;  %v374_v47 = vmul.f32 %v1508_v41, %v319_v44  ;;  %v375_v48 = vmul.f32 %v1510_v42, %v319_v44 }
  0x94   : > { %v435_v49 = vadd.f32 %v403_v43, %v372_v45  ;;  %v436_v50 = vadd.f32 %v403_v43, %v373_v46  ;;  %v437_v51 = vadd.f32 %v403_v43, %v374_v47  ;;  %v438_v52 = vadd.f32 %v403_v43, %v375_v48 }
  0x95   : > { %v408_v53 = vpop.permute.xlu1 %407  ;;  %v324_v54 = vpop.permute.xlu0 %323 }
  0x96   : > { %1134 = vtanh.f32 %v435_v49  ;;  %v376_v55 = vmul.f32 %v1504_v39, %v324_v54  ;;  %v377_v56 = vmul.f32 %v1506_v40, %v324_v54  ;;  %v378_v57 = vmul.f32 %v1508_v41, %v324_v54 }
  0x97   : > { %1136 = vtanh.f32 %v436_v50  ;;  %v379_v58 = vmul.f32 %v1510_v42, %v324_v54 }
  0x98   : > { %1138 = vtanh.f32 %v437_v51  ;;  %v439_v59 = vadd.f32 %v408_v53, %v376_v55  ;;  %v440_v60 = vadd.f32 %v408_v53, %v377_v56  ;;  %v441_v61 = vadd.f32 %v408_v53, %v378_v57 }
  0x99   : > { %1140 = vtanh.f32 %v438_v52  ;;  %v442_v62 = vadd.f32 %v408_v53, %v379_v58  ;;  %v334_v63 = vpop.permute.xlu1 %333  ;;  %v329_v0 = vpop.permute.xlu0 %328 }
  0x9a   : > { %1142 = vtanh.f32 %v439_v59  ;;  %v384_v1 = vmul.f32 %v1504_v39, %v334_v63  ;;  %v385_v2 = vmul.f32 %v1506_v40, %v334_v63  ;;  %v386_v3 = vmul.f32 %v1508_v41, %v334_v63 }
  0x9b   : > { %1144 = vtanh.f32 %v440_v60  ;;  %v387_v4 = vmul.f32 %v1510_v42, %v334_v63  ;;  %v380_v7 = vmul.f32 %v1504_v39, %v329_v0  ;;  %v381_v11 = vmul.f32 %v1506_v40, %v329_v0 }
  0x9c   : > { %1146 = vtanh.f32 %v441_v61  ;;  %v382_v14 = vmul.f32 %v1508_v41, %v329_v0  ;;  %v383_v17 = vmul.f32 %v1510_v42, %v329_v0 }
  0x9d   : > { %1148 = vtanh.f32 %v442_v62  ;;  %v418_v5 = vpop.permute.xlu1 %417  ;;  %v413_v6 = vpop.permute.xlu0 %412 }
  0x9e   : > { %v447_v8 = vadd.f32 %v418_v5, %v384_v1  ;;  %v448_v9 = vadd.f32 %v418_v5, %v385_v2  ;;  %v449_v10 = vadd.f32 %v418_v5, %v386_v3  ;;  %v450_v12 = vadd.f32 %v418_v5, %v387_v4 }
  0x9f   : > { %v443_v15 = vadd.f32 %v413_v6, %v380_v7  ;;  %v444_v18 = vadd.f32 %v413_v6, %v381_v11  ;;  %v445_v22 = vadd.f32 %v413_v6, %v382_v14  ;;  %v446_v24 = vadd.f32 %v413_v6, %v383_v17 }
  0xa0   : > { %v1135_v13 = vpop.eup %1134  ;;  %1150 = vtanh.f32 %v447_v8 }
  0xa1   : > { %v1137_v16 = vpop.eup %1136  ;;  %1152 = vtanh.f32 %v448_v9  ;;  %v344_v19 = vpop.permute.xlu1 %343 }
  0xa2   : > { %v339_v20 = vpop.permute.xlu0 %338  ;;  %v1139_v21 = vpop.eup %1138  ;;  %1154 = vtanh.f32 %v449_v10  ;;  %v392_v26 = vmul.f32 %v1504_v39, %v344_v19  ;;  %v393_v27 = vmul.f32 %v1506_v40, %v344_v19  ;;  %v394_v29 = vmul.f32 %v1508_v41, %v344_v19 }
  0xa3   : > { %v1141_v23 = vpop.eup %1140  ;;  %1156 = vtanh.f32 %v450_v12  ;;  %v395_v31 = vmul.f32 %v1510_v42, %v344_v19  ;;  %v388_v35 = vmul.f32 %v1504_v39, %v339_v20  ;;  %v389_v36 = vmul.f32 %v1506_v40, %v339_v20 }
  0xa4   : > { %v1143_v25 = vpop.eup %1142  ;;  %1158 = vtanh.f32 %v443_v15  ;;  %v390_v48 = vmul.f32 %v1508_v41, %v339_v20  ;;  %v391_v51 = vmul.f32 %v1510_v42, %v339_v20 }
  0xa5   : > { %v1145_v30 = vpop.eup %1144  ;;  %1160 = vtanh.f32 %v444_v18  ;;  %v428_v37 = vpop.permute.xlu1 %427  ;;  %v1068_v50 = vpack.c.bf16 %v1143_v25, %v1135_v13 }
  0xa6   : > { %v423_v38 = vpop.permute.xlu0 %422  ;;  %v1147_v43 = vpop.eup %1146  ;;  %1162 = vtanh.f32 %v445_v22  ;;  %v455_v44 = vadd.f32 %v428_v37, %v392_v26  ;;  %v456_v45 = vadd.f32 %v428_v37, %v393_v27  ;;  %v457_v46 = vadd.f32 %v428_v37, %v394_v29  ;;  %v293_v29 = vld [vmem:[%s1667_s3] sm:$0xff] }
  0xa7   : > { %v1149_v47 = vpop.eup %1148  ;;  %1164 = vtanh.f32 %v446_v24  ;;  %v458_v49 = vadd.f32 %v428_v37, %v395_v31  ;;  %v451_v52 = vadd.f32 %v423_v38, %v388_v35  ;;  %v1066_v53 = vpack.c.bf16 %v1145_v30, %v1137_v16  ;;  %v294_v31 = vld [vmem:[%s1667_s3 + $0x8] sm:$0xff]  ;;  %v295_v35 = vld [vmem:[%s1667_s3 + $0x10] sm:$0xff]  ;;  %v297_v37 = vld [vmem:[%s1667_s3 + $0x20] sm:$0xff] }
  0xa8   : > { %1166 = vtanh.f32 %v455_v44  ;;  %v452_v54 = vadd.f32 %v423_v38, %v389_v36  ;;  %v1078_v55 = vpack.c.bf16 %v1149_v47, %v1141_v23  ;;  %v1080_v56 = vpack.c.bf16 %v1147_v43, %v1139_v21  ;;  %v296_v36 = vld [vmem:[%s1667_s3 + $0x18] sm:$0xff]  ;;  %v299_v43 = vld [vmem:[%s1667_s3 + $0x30] sm:$0x3] }
  0xa9   : > { %1168 = vtanh.f32 %v456_v45  ;;  %v453_v59 = vadd.f32 %v423_v38, %v390_v48  ;;  %1067 = vmatprep.subr.bf16.mxu0 %v1066_v53  ;;  %v454_v63 = vadd.f32 %v423_v38, %v391_v51  ;;  %v433_v2 = vpop.permute.xlu1 %432  ;;  %v298_v38 = vld [vmem:[%s1667_s3 + $0x28] sm:$0xff] }
  0xaa   : > { %v349_v57 = vpop.permute.xlu0 %348  ;;  %v1151_v58 = vpop.eup %1150  ;;  %1170 = vtanh.f32 %v457_v46  ;;  %1079 = vmatprep.subr.bf16.mxu1 %v1078_v55  ;;  %1069 = vmatpush1.bf16.msra.mxu0 %v1068_v50 }
  0xab   : > { %v396_v60 = vmul.f32 %v1504_v39, %v349_v57  ;;  %v397_v61 = vmul.f32 %v1506_v40, %v349_v57  ;;  %v1153_v62 = vpop.eup %1152  ;;  %1172 = vtanh.f32 %v458_v49  ;;  %v399_v0 = vmul.f32 %v1510_v42, %v349_v57  ;;  %1081 = vmatpush1.bf16.msra.mxu1 %v1080_v56 }
  0xac   : > { %v1155_v1 = vpop.eup %1154  ;;  %1174 = vtanh.f32 %v451_v52  ;;  %v398_v3 = vmul.f32 %v1508_v41, %v349_v57 }
  0xad   : > { %v1157_v4 = vpop.eup %1156  ;;  %1176 = vtanh.f32 %v452_v54  ;;  %v460_v5 = vadd.f32 %v433_v2, %v397_v61  ;;  %v459_v39 = vadd.f32 %v433_v2, %v396_v60  ;;  %v462_v7 = vadd.f32 %v433_v2, %v399_v0  ;;  %v499_v45 = vpop.permute.xlu1 %498 }
  0xae   : > { %v1159_v6 = vpop.eup %1158  ;;  %1178 = vtanh.f32 %v453_v59  ;;  %v461_v10 = vadd.f32 %v433_v2, %v398_v3  ;;  %v494_v44 = vpop.permute.xlu0 %493 }
  0xaf   : > { %v1161_v40 = vpop.eup %1160  ;;  %1180 = vtanh.f32 %v454_v63  ;;  %v1072_v8 = vpack.c.bf16 %v1151_v58, %v1159_v6 }
  0xb0   : > { %v1163_v9 = vpop.eup %1162  ;;  %v1070_v11 = vpack.c.bf16 %v1153_v62, %v1161_v40  ;;  %1182 = vtanh.f32 %v460_v5 }
  0xb1   : > { %v1165_v42 = vpop.eup %1164  ;;  %v1084_v12 = vpack.c.bf16 %v1155_v1, %v1163_v9  ;;  %1184 = vtanh.f32 %v459_v39  ;;  %v509_v52 = vpop.permute.xlu1 %508 }
  0xb2   : > { %v1167_v13 = vpop.eup %1166  ;;  %1071 = vmatprep.subr.bf16.mxu0 %v1070_v11  ;;  %v1082_v41 = vpack.c.bf16 %v1157_v4, %v1165_v42  ;;  %1186 = vtanh.f32 %v462_v7  ;;  %v504_v46 = vpop.permute.xlu0 %503 }
  0xb3   : > { %v1169_v14 = vpop.eup %1168  ;;  %1073 = vmatpush1.bf16.msra.mxu0 %v1072_v8  ;;  %1188 = vtanh.f32 %v461_v10 }
  0xb4   : > { %v1171_v15 = vpop.eup %1170  ;;  %1083 = vmatprep.subr.bf16.mxu1 %v1082_v41 }
  0xb5   : > { %v1173_v16 = vpop.eup %1172  ;;  %1085 = vmatpush1.bf16.msra.mxu1 %v1084_v12  ;;  %v1593_v1 = vpop.permute.xlu1 %518 }
  0xb6   : > { %v1175_v17 = vpop.eup %1174 }
  0xb7   : > { %v1177_v18 = vpop.eup %1176  ;;  %v1076_v19 = vpack.c.bf16 %v1167_v13, %v1175_v17 }
  0xb8   : > { %v1179_v20 = vpop.eup %1178  ;;  %v1074_v21 = vpack.c.bf16 %v1169_v14, %v1177_v18 }
  0xb9   : > { %v1181_v22 = vpop.eup %1180  ;;  %v1088_v23 = vpack.c.bf16 %v1171_v15, %v1179_v20  ;;  %v806_v14 = vpop.permute.xlu1 %805 }
  0xba   : > { %1075 = vmatprep.subr.bf16.mxu0 %v1074_v21  ;;  %v1086_v24 = vpack.c.bf16 %v1173_v16, %v1181_v22  ;;  %v1183_v25 = vpop.eup %1182 }
  0xbb   : > { %1077 = vmatpush1.bf16.msra.mxu0 %v1076_v19  ;;  %v1185_v26 = vpop.eup %1184 }
  0xbc   : > { %1087 = vmatprep.subr.bf16.mxu1 %v1086_v24  ;;  %1042 = vmatprep.subr.msk.mxu0 %vm548_vm0, %v1183_v25  ;;  %v1187_v27 = vpop.eup %1186 }
  0xbd   : > { %1089 = vmatpush1.bf16.msra.mxu1 %v1088_v23  ;;  %v1189_v30 = vpop.eup %1188 }
  0xbe   : > { %1051 = vmatprep.subr.msk.mxu1 %vm548_vm0, %v1187_v27 }
  0xbf   : > { %1043 = vmatpush1.msk.msra.mxu0 %vm548_vm0, %v1185_v26 }
  0xc0   : > { %1044 = vmatmul.mubr.msk.f32.vlgmr.msra.gmra.mrb[0].mxu0 %vm526_vm1, %v293_v29 }
  0xc1   : > { %1052 = vmatpush1.msk.msra.mxu1 %vm548_vm0, %v1189_v30  ;;  %631 = vmatprep.mubr.f32.mxu0 %v1311_v28 }
  0xc2   : > { %1053 = vmatmul.mubr.msk.f32.vlgmr.msra.gmra.mrb[0].mxu1 %vm526_vm1, %v293_v29 }
  0xc3   : > { %738 = vmatprep.mubr.f32.mxu1 %v1311_v28 }
  0xc4   : > { %1045 = vmatmul.mubr.msk.f32.gmra.mrb[2].mxu0 %vm526_vm1, %v294_v31 }
  0xc5   : > { %637 = vmatprep.mubr.f32.mxu0 %v1311_v28 }
  0xc6   : > { %1054 = vmatmul.mubr.msk.f32.gmra.mrb[2].mxu1 %vm526_vm1, %v294_v31 }
  0xc7   : > { %744 = vmatprep.mubr.f32.mxu1 %v1311_v28 }
  0xc8   : > { %1046 = vmatmul.mubr.msk.f32.gmra.mrb[4].mxu0 %vm526_vm1, %v295_v35 }
  0xc9   : > { %643 = vmatprep.mubr.f32.mxu0 %v1311_v28 }
  0xca   : > { %1055 = vmatmul.mubr.msk.f32.gmra.mrb[4].mxu1 %vm526_vm1, %v295_v35 }
  0xcb   : > { %750 = vmatprep.mubr.f32.mxu1 %v1311_v28 }
  0xcc   : > { %1047 = vmatmul.mubr.msk.f32.gmra.mrb[6].mxu0 %vm526_vm1, %v296_v36 }
  0xcd   : > { %649 = vmatprep.mubr.f32.mxu0 %v1311_v28 }
  0xce   : > { %1056 = vmatmul.mubr.msk.f32.gmra.mrb[6].mxu1 %vm526_vm1, %v296_v36 }
  0xcf   : > { %756 = vmatprep.mubr.f32.mxu1 %v1311_v28 }
  0xd0   : > { %1048 = vmatmul.mubr.msk.f32.gmra.mrb[8].mxu0 %vm526_vm1, %v297_v37 }
  0xd1   : > { %655 = vmatprep.mubr.f32.mxu0 %v1311_v28 }
  0xd2   : > { %1057 = vmatmul.mubr.msk.f32.gmra.mrb[8].mxu1 %vm526_vm1, %v297_v37 }
  0xd3   : > { %762 = vmatprep.mubr.f32.mxu1 %v1311_v28 }
  0xd4   : > { %1049 = vmatmul.mubr.msk.f32.gmra.mrb[10].mxu0 %vm526_vm1, %v298_v38 }
  0xd5   : > { %661 = vmatprep.mubr.f32.mxu0 %v1311_v28 }
  0xd6   : > { %1058 = vmatmul.mubr.msk.f32.gmra.mrb[10].mxu1 %vm526_vm1, %v298_v38 }
  0xd7   : > { %768 = vmatprep.mubr.f32.mxu1 %v1311_v28  ;;  %v1591_v28 = vpop.permute.xlu0 %513 }
  0xd8   : > { %1050 = vmatmul.mubr.msk.f32.gmra.mrb[12].mxu0 %vm526_vm1, %v299_v43 }
  0xda   : > { %1059 = vmatmul.mubr.msk.f32.gmra.mrb[12].mxu1 %vm526_vm1, %v299_v43 }
  0xdb   : > { %v1595_v6 = vpop.permute.xlu0 %523 }
  0xdf   : > { %v811_v21 = vpop.permute.xlu0 %810 }
 0x193   : > { %v627_v47 = vpop.f32.mrb[0].mxu0 }
 0x194   : > { %v628_v48 = vadd.f32 %v627_v47, %v494_v44  ;;  %v629_v49 = vpop.f32.mrb[1].mxu0 }
 0x195   : > { %v734_v50 = vpop.f32.mrb[0].mxu1  ;;  %v630_v51 = vadd.f32 %v629_v49, %v494_v44 }
 0x196   : > { %1190 = vtanh.f32 %v628_v48  ;;  %v735_v53 = vadd.f32 %v734_v50, %v494_v44  ;;  %v736_v54 = vpop.f32.mrb[1].mxu1  ;;  %v816_v50 = vpop.permute.xlu1 %815 }
 0x197   : > { %1192 = vtanh.f32 %v630_v51  ;;  %v737_v55 = vadd.f32 %v736_v54, %v494_v44  ;;  %v633_v56 = vpop.f32.mrb[2].mxu0 }
 0x198   : > { %1194 = vtanh.f32 %v735_v53  ;;  %v634_v57 = vadd.f32 %v633_v56, %v499_v45  ;;  %v635_v58 = vpop.f32.mrb[3].mxu0 }
 0x199   : > { %1196 = vtanh.f32 %v737_v55  ;;  %v740_v59 = vpop.f32.mrb[2].mxu1  ;;  %v636_v60 = vadd.f32 %v635_v58, %v499_v45 }
 0x19a   : > { %1198 = vtanh.f32 %v634_v57  ;;  %v741_v61 = vadd.f32 %v740_v59, %v499_v45  ;;  %v742_v62 = vpop.f32.mrb[3].mxu1 }
 0x19b   : > { %1200 = vtanh.f32 %v636_v60  ;;  %v743_v63 = vadd.f32 %v742_v62, %v499_v45  ;;  %v639_v0 = vpop.f32.mrb[4].mxu0 }
 0x19c   : > { %1202 = vtanh.f32 %v741_v61  ;;  %v640_v2 = vadd.f32 %v639_v0, %v504_v46  ;;  %v641_v3 = vpop.f32.mrb[5].mxu0 }
 0x19d   : > { %1204 = vtanh.f32 %v743_v63  ;;  %v746_v4 = vpop.f32.mrb[4].mxu1  ;;  %v642_v5 = vadd.f32 %v641_v3, %v504_v46 }
 0x19e   : > { %1206 = vtanh.f32 %v640_v2  ;;  %v747_v39 = vadd.f32 %v746_v4, %v504_v46  ;;  %v748_v40 = vpop.f32.mrb[5].mxu1 }
 0x19f   : > { %1208 = vtanh.f32 %v642_v5  ;;  %v749_v7 = vadd.f32 %v748_v40, %v504_v46  ;;  %v645_v8 = vpop.f32.mrb[6].mxu0  ;;  %v821_v40 = vpop.permute.xlu0 %820 }
 0x1a0   : > { %v1191_v9 = vpop.eup %1190  ;;  %1210 = vtanh.f32 %v747_v39  ;;  %v646_v10 = vadd.f32 %v645_v8, %v509_v52  ;;  %v647_v11 = vpop.f32.mrb[7].mxu0 }
 0x1a1   : > { %v1193_v42 = vpop.eup %1192  ;;  %1212 = vtanh.f32 %v749_v7  ;;  %v752_v12 = vpop.f32.mrb[6].mxu1  ;;  %v648_v13 = vadd.f32 %v647_v11, %v509_v52  ;;  %v838_v22 = vmul.f32 %v1191_v9, %v806_v14 }
 0x1a2   : > { %v1195_v41 = vpop.eup %1194  ;;  %1214 = vtanh.f32 %v646_v10  ;;  %v753_v15 = vadd.f32 %v752_v12, %v509_v52  ;;  %v754_v16 = vpop.f32.mrb[7].mxu1  ;;  %v839_v23 = vmul.f32 %v1193_v42, %v806_v14 }
 0x1a3   : > { %v1197_v17 = vpop.eup %1196  ;;  %1216 = vtanh.f32 %v648_v13  ;;  %v755_v18 = vadd.f32 %v754_v16, %v509_v52  ;;  %v651_v19 = vpop.f32.mrb[8].mxu0  ;;  %v840_v27 = vmul.f32 %v1195_v41, %v806_v14 }
 0x1a4   : > { %v1199_v20 = vpop.eup %1198  ;;  %1218 = vtanh.f32 %v753_v15  ;;  %v652_v24 = vadd.f32 %v651_v19, %v1591_v28  ;;  %v653_v25 = vpop.f32.mrb[9].mxu0  ;;  %v841_v36 = vmul.f32 %v1197_v17, %v806_v14 }
 0x1a5   : > { %v1201_v26 = vpop.eup %1200  ;;  %v842_v29 = vmul.f32 %v1199_v20, %v811_v21  ;;  %1220 = vtanh.f32 %v755_v18  ;;  %v758_v30 = vpop.f32.mrb[8].mxu1  ;;  %v654_v31 = vadd.f32 %v653_v25, %v1591_v28 }
 0x1a6   : > { %v1203_v35 = vpop.eup %1202  ;;  %v843_v37 = vmul.f32 %v1201_v26, %v811_v21  ;;  %1222 = vtanh.f32 %v652_v24  ;;  %v759_v38 = vadd.f32 %v758_v30, %v1591_v28  ;;  %v760_v43 = vpop.f32.mrb[9].mxu1 }
 0x1a7   : > { %v1205_v44 = vpop.eup %1204  ;;  %v866_v45 = vadd.f32 %v842_v29, %v838_v22  ;;  %v844_v46 = vmul.f32 %v1203_v35, %v811_v21  ;;  %1224 = vtanh.f32 %v654_v31  ;;  %v761_v47 = vadd.f32 %v760_v43, %v1591_v28  ;;  %v657_v48 = vpop.f32.mrb[10].mxu0 }
 0x1a8   : > { %v1207_v49 = vpop.eup %1206  ;;  %v879_v51 = vadd.f32 %v843_v37, %v839_v23  ;;  %v845_v52 = vmul.f32 %v1205_v44, %v811_v21  ;;  %1226 = vtanh.f32 %v759_v38  ;;  %v658_v53 = vadd.f32 %v657_v48, %v1593_v1  ;;  %v659_v54 = vpop.f32.mrb[11].mxu0 }
 0x1a9   : > { %v1209_v55 = vpop.eup %1208  ;;  %v892_v56 = vadd.f32 %v844_v46, %v840_v27  ;;  %v846_v57 = vmul.f32 %v1207_v49, %v816_v50  ;;  %1228 = vtanh.f32 %v761_v47  ;;  %v764_v58 = vpop.f32.mrb[10].mxu1  ;;  %v660_v59 = vadd.f32 %v659_v54, %v1593_v1 }
 0x1aa   : > { %v1211_v60 = vpop.eup %1210  ;;  %v905_v61 = vadd.f32 %v845_v52, %v841_v36  ;;  %v847_v62 = vmul.f32 %v1209_v55, %v816_v50  ;;  %1230 = vtanh.f32 %v658_v53  ;;  %v765_v28 = vadd.f32 %v764_v58, %v1593_v1  ;;  %v766_v63 = vpop.f32.mrb[11].mxu1 }
 0x1ab   : > { %v1213_v0 = vpop.eup %1212  ;;  %v867_v2 = vadd.f32 %v866_v45, %v846_v57  ;;  %v848_v3 = vmul.f32 %v1211_v60, %v816_v50  ;;  %1232 = vtanh.f32 %v660_v59  ;;  %v767_v4 = vadd.f32 %v766_v63, %v1593_v1  ;;  %v663_v5 = vpop.f32.mrb[12].mxu0 }
 0x1ac   : > { %v1215_v39 = vpop.eup %1214  ;;  %v880_v7 = vadd.f32 %v879_v51, %v847_v62  ;;  %v849_v8 = vmul.f32 %v1213_v0, %v816_v50  ;;  %1234 = vtanh.f32 %v765_v28  ;;  %v664_v9 = vadd.f32 %v663_v5, %v1595_v6  ;;  %v665_v10 = vpop.f32.mrb[13].mxu0 }
 0x1ad   : > { %v1217_v11 = vpop.eup %1216  ;;  %v893_v42 = vadd.f32 %v892_v56, %v848_v3  ;;  %v850_v12 = vmul.f32 %v1215_v39, %v821_v40  ;;  %1236 = vtanh.f32 %v767_v4  ;;  %v770_v13 = vpop.f32.mrb[12].mxu1  ;;  %v666_v41 = vadd.f32 %v665_v10, %v1595_v6 }
 0x1ae   : > { %v1219_v14 = vpop.eup %1218  ;;  %v906_v15 = vadd.f32 %v905_v61, %v849_v8  ;;  %v851_v16 = vmul.f32 %v1217_v11, %v821_v40  ;;  %1238 = vtanh.f32 %v664_v9  ;;  %v771_v1 = vadd.f32 %v770_v13, %v1595_v6  ;;  %v772_v17 = vpop.f32.mrb[13].mxu1 }
 0x1af   : > { %v1221_v18 = vpop.eup %1220  ;;  %v868_v19 = vadd.f32 %v867_v2, %v850_v12  ;;  %v852_v20 = vmul.f32 %v1219_v14, %v821_v40  ;;  %1240 = vtanh.f32 %v666_v41  ;;  %v773_v21 = vadd.f32 %v772_v17, %v1595_v6  ;;  %v826_v23 = vpop.permute.xlu1 %825 }
 0x1b0   : > { %v1223_v22 = vpop.eup %1222  ;;  %v881_v24 = vadd.f32 %v880_v7, %v851_v16  ;;  %v853_v25 = vmul.f32 %v1221_v18, %v821_v40  ;;  %1242 = vtanh.f32 %v771_v1  ;;  %v831_v44 = vpop.permute.xlu0 %830  ;;  %v1312_v18 = vmov 1966171168  }
 0x1b1   : > { %v1225_v26 = vpop.eup %1224  ;;  %v894_v27 = vadd.f32 %v893_v42, %v852_v20  ;;  %v854_v29 = vmul.f32 %v1223_v22, %v826_v23  ;;  %1244 = vtanh.f32 %v773_v21 }
 0x1b2   : > { %v1227_v30 = vpop.eup %1226  ;;  %v907_v31 = vadd.f32 %v906_v15, %v853_v25  ;;  %v855_v35 = vmul.f32 %v1225_v26, %v826_v23 }
 0x1b3   : > { %v1229_v36 = vpop.eup %1228  ;;  %v869_v37 = vadd.f32 %v868_v19, %v854_v29  ;;  %v856_v38 = vmul.f32 %v1227_v30, %v826_v23  ;;  %v836_v56 = vpop.permute.xlu1 %835  ;;  %v938_v19 = vunpack.c.l.s4 %v1312_v18 }
 0x1b4   : > { %v1231_v43 = vpop.eup %1230  ;;  %v882_v45 = vadd.f32 %v881_v24, %v855_v35  ;;  %v857_v46 = vmul.f32 %v1229_v36, %v826_v23  ;;  %v921_v22 = vpop.permute.xlu0 %920 }
 0x1b5   : > { %v1233_v6 = vpop.eup %1232  ;;  %v895_v47 = vadd.f32 %v894_v27, %v856_v38  ;;  %v858_v48 = vmul.f32 %v1231_v43, %v831_v44  ;;  %v939_v30 = vunpack.c.0.s8 %v938_v19 }
 0x1b6   : > { %v1235_v49 = vpop.eup %1234  ;;  %v908_v50 = vadd.f32 %v907_v31, %v857_v46  ;;  %v859_v51 = vmul.f32 %v1233_v6, %v831_v44  ;;  %v926_v31 = vrot.slane %v921_v22, %v354_v34 }
 0x1b7   : > { %v1237_v52 = vpop.eup %1236  ;;  %v870_v53 = vadd.f32 %v869_v37, %v858_v48  ;;  %v860_v54 = vmul.f32 %v1235_v49, %v831_v44  ;;  %v942_v6 = vsub.s32 %v939_v30, %v1493_v33 }
 0x1b8   : > { %v1239_v55 = vpop.eup %1238  ;;  %v883_v57 = vadd.f32 %v882_v45, %v859_v51  ;;  %v861_v58 = vmul.f32 %v1237_v52, %v831_v44 }
 0x1b9   : > { %v1241_v59 = vpop.eup %1240  ;;  %v896_v60 = vadd.f32 %v895_v47, %v860_v54  ;;  %v862_v61 = vmul.f32 %v1239_v55, %v836_v56 }
 0x1ba   : > { %v1243_v62 = vpop.eup %1242  ;;  %v909_v28 = vadd.f32 %v908_v50, %v861_v58  ;;  %v863_v63 = vmul.f32 %v1241_v59, %v836_v56 }
 0x1bb   : > { %v1245_v0 = vpop.eup %1244  ;;  %v871_v2 = vsel %vm548_vm0, %v862_v61, 0.0  ;;  %v864_v3 = vmul.f32 %v1243_v62, %v836_v56 }
 0x1bc   : > { %v872_v4 = vadd.f32 %v871_v2, %v870_v53  ;;  %v884_v5 = vsel %vm548_vm0, %v863_v63, 0.0  ;;  %v865_v39 = vmul.f32 %v1245_v0, %v836_v56 }
 0x1bd   : > { %v897_v40 = vsel %vm548_vm0, %v864_v3, 0.0  ;;  %v885_v7 = vadd.f32 %v884_v5, %v883_v57 }
 0x1be   : > { %v873_v8 = vrot.slane %v872_v4, 4  ;;  %v898_v9 = vadd.f32 %v897_v40, %v896_v60  ;;  %v910_v10 = vsel %vm548_vm0, %v865_v39, 0.0 }
 0x1bf   : > { %v886_v11 = vrot.slane %v885_v7, 4  ;;  %v911_v42 = vadd.f32 %v910_v10, %v909_v28 }
 0x1c0   : > { %v874_v12 = vadd.f32 %v873_v8, %v872_v4  ;;  %v899_v13 = vrot.slane %v898_v9, 4 }
 0x1c1   : > { %v887_v41 = vadd.f32 %v886_v11, %v885_v7  ;;  %v912_v14 = vrot.slane %v911_v42, 4 }
 0x1c2   : > { %v875_v15 = vrot.slane %v874_v12, 2  ;;  %v900_v16 = vadd.f32 %v899_v13, %v898_v9 }
 0x1c3   : > { %v888_v1 = vrot.slane %v887_v41, 2  ;;  %v913_v17 = vadd.f32 %v912_v14, %v911_v42 }
 0x1c4   : > { %v876_v20 = vadd.f32 %v875_v15, %v874_v12  ;;  %v901_v21 = vrot.slane %v900_v16, 2 }
 0x1c5   : > { %v889_v23 = vadd.f32 %v888_v1, %v887_v41  ;;  %v914_v24 = vrot.slane %v913_v17, 2 }
 0x1c6   : > { %v902_v25 = vadd.f32 %v901_v21, %v900_v16  ;;  %v877_v26 = vrot.slane %v876_v20, 1 }
 0x1c7   : > { %v915_v27 = vadd.f32 %v914_v24, %v913_v17  ;;  %v890_v29 = vrot.slane %v889_v23, 1 }
 0x1c8   : > { %v878_v35 = vadd.f32 %v877_v26, %v876_v20  ;;  %v903_v36 = vrot.slane %v902_v25, 1 }
 0x1c9   : > { %v891_v37 = vadd.f32 %v890_v29, %v889_v23  ;;  %v916_v38 = vrot.slane %v915_v27, 1 }
 0x1ca   : > { %v904_v43 = vadd.f32 %v903_v36, %v902_v25  ;;  %v927_v44 = vadd.f32 %v926_v31, %v878_v35 }
 0x1cb   : > { %v917_v45 = vadd.f32 %v916_v38, %v915_v27  ;;  %v928_v46 = vadd.f32 %v926_v31, %v891_v37 }
 0x1cc   : > { %v929_v47 = vadd.f32 %v926_v31, %v904_v43 }
 0x1cd   : > { %v930_v48 = vadd.f32 %v926_v31, %v917_v45  ;;  %v935_v49 = vcombine.low %v927_v44, %v928_v46 }
 0x1cf   : > { %v936_v50 = vcombine.low %v929_v47, %v930_v48  ;;  %v943_v51 = vrot.slane %v935_v49, %v942_v6 }
 0x1d1   : > { %v950_v34 = vrot.slane %v936_v50, %v942_v6 }
 0x1d3   : > { %v951_v52 = vcombine.low %v943_v51, %v950_v34 }
 0x1d5   : > { %v958_v53 = vrot.slane %v951_v52, %v942_v6 }
 0x1d7   : > { %964 = vst.msk [vmem:[%s272_s16] sm:$0xf] %vm962_vm2, %v958_v53 }
 0x1d8   : > { %1259 = shalt.err (!%p1256_p3)
}
 0x1d9   : > { %s1260_s25 = scalar_lea.hbm %s1622_s20, 64  ;;  %s1264_s10 = scalar_lea.hbm %s1671_s7, 128 }
 0x1da   : > { %p1261_p4 = scmp.ne.s32.totalorder %s1622_s20, %s1260_s25  ;;  %p1265_p9 = scmp.lt.u32.totalorder %s1622_s20, %s1671_s7 }
 0x1db   : > { %p1266_p10 = scmp.lt.u32.totalorder %s1264_s10, %s1260_s25  ;;  %p1268_p12 = scmp.lt.u32.totalorder %s1260_s25, %s1622_s20 }
 0x1dc   : > { %p1262_p7 = pnand %p1261_p4, %p1395_p5 }
 0x1dd   : > { %p1267_p11 = por %p1266_p10, %p1265_p9 }
 0x1de   : > { %p1263_p8 = pneg %p1262_p7 }
 0x1df   : > { %p1269_p13 = por %p1268_p12, %p1267_p11 }
 0x1e1   : > { %p1270_p0 = pnand %p1269_p13, %p1263_p8 }
 0x1e3   : > { %1273 = shalt.err (!%p1270_p0)
}
 0x1e4   : > { %1090 = dma.vmem_to_hbm [thread:$0]  (%p1395_p5), %s1624_s17, 64, %s1622_s20, %s966_s21  }
 0x1e5 PF: > { %p1096_p1 = scmp.ge.s32.totalorder %s1308_s29, 2  ;;  %s992_s16 = sand.u32 1, %s1296_s26  }
 0x1e6   : > { %s993_s18 = scalar_lea.sflag [#allocation4], %s992_s16 }
 0x1e7   : > { %p1093_p2 = pnand %p1096_p1, %p1399_p6 }
 0x1e9   : > { %1291 = dma.done.wait (!%p1093_p2), %s993_s18, 64  }
 0x1ea   : > { %1293 = vsyncadd (!%p1093_p2), %s993_s18, 4294967232  ;;  %p19_p3 = scmp.ge.s32.totalorder %s1382_s8, 4   ;;  %s1674_s26 = smov %s1300_s27 }
 0x1eb   : > { %s1675_s27 = smov %s1304_s28  ;;  %s1676_s28 = smov %s1393_s11 }
 0x1ec   : > { %s1677_s29 = smov %s1382_s8  ;;  %21 = sbr.rel (!%p19_p3) target bundleno = 6 (0x6), region = 83 }
 0x1f3   :  { %998 = vsyncpa [#allocation4], 1 }
 0x1f4   :  { %1000 = vsyncpa [#allocation4 + $0x1], 1 }

</bundles_post_ra>
